<compile_context>
chip_gen: v7x
topology: tpu7x:2x2x1
jax: 0.10.0
libtpu: 0.0.40
codegen_flags: <defaults>
</compile_context>

<pallas_src>
import math
from functools import partial

import jax
import jax.numpy as jnp
from jax.experimental import pallas as pl
from jax.experimental.pallas import tpu as pltpu

_ROW_ALIGN = 16  # bf16-friendly sublane quantum


def _round_up(n, m):
    return ((n + m - 1) // m) * m


def decoder_kernel(x_ref, w1_ref, b1_ref, w2_ref, b2_ref, o_ref):
    # Layer 1: Linear(in -> hidden) on the MXU, bf16 operands, f32 accumulation.
    h = jnp.dot(x_ref[...], w1_ref[...], preferred_element_type=jnp.float32)
    # Bias + ReLU in f32 on the VPU.
    h = jnp.maximum(h + b1_ref[...], 0.0)
    # Dropout(p=0.5): eval/inference-mode identity.
    # Layer 2: Linear(hidden -> out), bf16 operands, f32 accumulation.
    y = jnp.dot(h.astype(w2_ref.dtype), w2_ref[...], preferred_element_type=jnp.float32)
    o_ref[...] = (y + b2_ref[...]).astype(o_ref.dtype)


def prepare_decoder_params(w1, b1, w2, b2, compute_dtype=jnp.bfloat16):
    """One-time prep: pad hidden/out feature dims to multiples of 128 (lane-dense),
    cast weights to bf16, keep biases in f32.  Padding is exact: padded hidden
    units are ReLU(0+0)=0 against zero W2 rows; padded output lanes are sliced off.
    The layer-1 contraction dim (in_size) is deliberately left unpadded so the
    per-call x traffic is not inflated."""
    in_size, hidden = w1.shape
    out_size = w2.shape[1]
    H = _round_up(hidden, 128)
    N = _round_up(out_size, 128)

    w1p = jnp.zeros((in_size, H), compute_dtype).at[:, :hidden].set(w1.astype(compute_dtype))
    b1p = jnp.zeros((1, H), jnp.float32).at[:, :hidden].set(
        jnp.reshape(b1, (1, hidden)).astype(jnp.float32))
    w2p = jnp.zeros((H, N), compute_dtype).at[:hidden, :out_size].set(w2.astype(compute_dtype))
    b2p = jnp.zeros((1, N), jnp.float32).at[:, :out_size].set(
        jnp.reshape(b2, (1, out_size)).astype(jnp.float32))

    return {"w1": w1p, "b1": b1p, "w2": w2p, "b2": b2p,
            "in_size": in_size, "hidden": hidden, "out_size": out_size}


def _pick_tile_b(B):
    # Big tiles amortize ~0.35us/grid-step overhead and get close to the HBM
    # roofline (measured ~85% at 512-1024 rows on v5e/v6e); cap at 512.
    tb = min(_round_up(B, _ROW_ALIGN), 512)
    # v7x: keep >= 2 parallel grid steps for non-trivial batches so both
    # TensorCores are used.
    if B > _ROW_ALIGN:
        tb = min(tb, _round_up(-(-B // 2), _ROW_ALIGN))
    return max(tb, _ROW_ALIGN)


@partial(jax.jit, static_argnames=("out_size", "tile_b", "single_buffer_weights"))
def _decoder_forward_jit(x, w1p, b1p, w2p, b2p, *, out_size, tile_b, single_buffer_weights):
    B, in_size = x.shape
    H = w1p.shape[1]
    N = w2p.shape[1]
    wb = w1p.dtype.itemsize  # compute dtype bytes (bf16 -> 2)

    # Per-call x prep: cast to compute dtype, pad batch to a tile multiple (fused under jit).
    Bp = _round_up(B, tile_b)
    xp = x.astype(w1p.dtype)
    if Bp != B:
        xp = jnp.zeros((Bp, in_size), w1p.dtype).at[:B, :].set(xp)
    grid = (Bp // tile_b,)

    # Advisory cost estimate (weights read once, x/out once per batch row).
    flops = 2 * Bp * (in_size * H + H * N)
    bytes_accessed = (Bp * in_size * wb                      # x
                      + (in_size * H + H * N) * wb           # weights
                      + (H + N) * 4                          # biases (f32)
                      + Bp * N * 4)                          # output (f32)
    cost = pl.CostEstimate(flops=int(flops), transcendentals=0,
                           bytes_accessed=int(bytes_accessed))

    # VMEM budget: double-buffered x/out tiles + resident weights/biases
    # (1x if single-buffered) + f32 hidden intermediate, 1.5x headroom,
    # clamped well under v7x's 64 MiB physical VMEM.
    n_wbuf = 1 if single_buffer_weights else 2
    vmem_bytes = (2 * tile_b * (in_size * wb + N * 4)
                  + n_wbuf * ((in_size * H + H * N) * wb + (H + N) * 4)
                  + tile_b * H * 4)
    vmem_limit = int(min(48 * 1024 * 1024, max(8 * 1024 * 1024, 1.5 * vmem_bytes)))

    if single_buffer_weights:
        # Constant index_map across the grid -> a single VMEM buffer suffices.
        def resident(shape):
            return pl.BlockSpec(shape, lambda i: (0, 0), pipeline_mode=pl.Buffered(1))
    else:
        def resident(shape):
            return pl.BlockSpec(shape, lambda i: (0, 0))

    out = pl.pallas_call(
        decoder_kernel,
        out_shape=jax.ShapeDtypeStruct((Bp, N), jnp.float32),
        grid_spec=pltpu.PrefetchScalarGridSpec(
            num_scalar_prefetch=0,
            grid=grid,
            in_specs=[
                pl.BlockSpec((tile_b, in_size), lambda i: (i, 0)),  # x tile (K unpadded)
                resident((in_size, H)),                             # W1
                resident((1, H)),                                   # b1
                resident((H, N)),                                   # W2
                resident((1, N)),                                   # b2
            ],
            out_specs=pl.BlockSpec((tile_b, N), lambda i: (i, 0)),
        ),
        compiler_params=pltpu.CompilerParams(
            dimension_semantics=("parallel",),
            vmem_limit_bytes=vmem_limit,
        ),
        cost_estimate=cost,
    )(xp, w1p, b1p, w2p, b2p)

    # Strip batch / output-lane padding.
    return out[:B, :out_size]


def decoder_forward(x, params, *, tile_b=None):
    """y = ReLU(x @ W1 + b1) @ W2 + b2 (Dropout in eval mode). params from prepare_decoder_params."""
    B = x.shape[0]
    if tile_b is None:
        tile_b = _pick_tile_b(B)
    args = (x, params["w1"], params["b1"], params["w2"], params["b2"])
    try:
        return _decoder_forward_jit(*args, out_size=params["out_size"],
                                    tile_b=tile_b, single_buffer_weights=True)
    except Exception:
        # Fallback for JAX versions where pipeline_mode=pl.Buffered(1) is not
        # supported by the TPU pallas_call pipeline (default double-buffering).
        return _decoder_forward_jit(*args, out_size=params["out_size"],
                                    tile_b=tile_b, single_buffer_weights=False)


def init_linear_params(key, in_features, out_features, dtype=jnp.float32):
    """Deterministic init mimicking PyTorch nn.Linear default bounds."""
    kw, kb = jax.random.split(key)
    bound = 1.0 / math.sqrt(in_features)
    # Stored transposed: [in_features, out_features] so the kernel does x @ W.
    w = jax.random.uniform(kw, (in_features, out_features), dtype, -bound, bound)
    b = jax.random.uniform(kb, (1, out_features), dtype, -bound, bound)
    return w, b


if __name__ == "__main__":
    # Shapes consistent with Decoder(input_size, output_size, hidden_size=128, num_layers=2)
    batch = 32
    input_size = 32
    hidden_size = 128
    output_size = 64

    key = jax.random.PRNGKey(0)
    kx, k1, k2 = jax.random.split(key, 3)

    x = jax.random.normal(kx, (batch, input_size), jnp.float32)
    w1, b1 = init_linear_params(k1, input_size, hidden_size)
    w2, b2 = init_linear_params(k2, hidden_size, output_size)

    # One-time padding / bf16 cast of the parameters (hoisted out of the forward).
    params = prepare_decoder_params(w1, b1, w2, b2)

    out = decoder_forward(x, params)
    out = jax.block_until_ready(out)

    # bf16-matched reference (same rounding points as the kernel): tight check.
    xb, w1b, w2b = (a.astype(jnp.bfloat16) for a in (x, w1, w2))
    h_ref = jnp.maximum(jnp.dot(xb, w1b, preferred_element_type=jnp.float32) + b1, 0.0)
    ref_bf16 = jnp.dot(h_ref.astype(jnp.bfloat16), w2b, preferred_element_type=jnp.float32) + b2
    # Full-f32 reference (module semantics): looser sanity check.
    ref_f32 = jnp.maximum(x @ w1 + b1, 0.0) @ w2 + b2

    assert out.shape == (batch, output_size)
    assert out.dtype == jnp.float32
    assert jnp.allclose(out, ref_bf16, atol=5e-3, rtol=5e-3)
    assert jnp.allclose(out, ref_f32, atol=5e-2, rtol=5e-2)

    print("KERNEL_OK")
</pallas_src>

<mosaic_0001>
module attributes {stable_mosaic.version = 11 : i64} {
  func.func @decoder_kernel(%arg0: i32, %arg1: memref<16x32xbf16, #tpu.memory_space<vmem>>, %arg2: memref<32x128xbf16, #tpu.memory_space<vmem>>, %arg3: memref<1x128xf32, #tpu.memory_space<vmem>>, %arg4: memref<128x128xbf16, #tpu.memory_space<vmem>>, %arg5: memref<1x128xf32, #tpu.memory_space<vmem>>, %arg6: memref<16x128xf32, #tpu.memory_space<vmem>>) attributes {dimension_semantics = [#tpu.dimension_semantics<parallel>], iteration_bounds = array<i64: 2>, scalar_prefetch = 0 : i64, scratch_operands = 0 : i64, tpu.core_type = #tpu.core_type<tc>, window_params = [{transform_indices = @transform_0, window_bounds = array<i64: 16, 32>}, {pipeline_mode = #tpu.pipeline_mode<synchronous>, transform_indices = @transform_1, window_bounds = array<i64: 32, 128>}, {pipeline_mode = #tpu.pipeline_mode<synchronous>, transform_indices = @transform_2, window_bounds = array<i64: 1, 128>}, {pipeline_mode = #tpu.pipeline_mode<synchronous>, transform_indices = @transform_3, window_bounds = array<i64: 128, 128>}, {pipeline_mode = #tpu.pipeline_mode<synchronous>, transform_indices = @transform_4, window_bounds = array<i64: 1, 128>}, {transform_indices = @transform_5, window_bounds = array<i64: 16, 128>}]} {
    %c0 = arith.constant 0 : index
    %c0_0 = arith.constant 0 : index
    %0 = vector.load %arg1[%c0, %c0_0] : memref<16x32xbf16, #tpu.memory_space<vmem>>, vector<16x32xbf16>
    %c0_1 = arith.constant 0 : index
    %c0_2 = arith.constant 0 : index
    %1 = vector.load %arg2[%c0_1, %c0_2] : memref<32x128xbf16, #tpu.memory_space<vmem>>, vector<32x128xbf16>
    %cst = arith.constant dense<0.000000e+00> : vector<16x128xf32>
    %2 = tpu.matmul %0, %1, %cst {dimension_numbers = #tpu.dot_dimension_numbers<[1], [0], [0], [1], [0, 0, 1, 1], [], []>} : vector<16x32xbf16>, vector<32x128xbf16>, vector<16x128xf32> -> vector<16x128xf32>
    %c0_3 = arith.constant 0 : index
    %c0_4 = arith.constant 0 : index
    %3 = vector.load %arg3[%c0_3, %c0_4] : memref<1x128xf32, #tpu.memory_space<vmem>>, vector<1x128xf32>
    %4 = vector.broadcast %3 : vector<1x128xf32> to vector<16x128xf32>
    %5 = arith.addf %2, %4 : vector<16x128xf32>
    %cst_5 = arith.constant 0.000000e+00 : f32
    %6 = vector.broadcast %cst_5 : f32 to vector<16x128xf32>
    %7 = arith.maximumf %5, %6 : vector<16x128xf32>
    %8 = arith.truncf %7 : vector<16x128xf32> to vector<16x128xbf16>
    %c0_6 = arith.constant 0 : index
    %c0_7 = arith.constant 0 : index
    %9 = vector.load %arg4[%c0_6, %c0_7] : memref<128x128xbf16, #tpu.memory_space<vmem>>, vector<128x128xbf16>
    %cst_8 = arith.constant dense<0.000000e+00> : vector<16x128xf32>
    %10 = tpu.matmul %8, %9, %cst_8 {dimension_numbers = #tpu.dot_dimension_numbers<[1], [0], [0], [1], [0, 0, 1, 1], [], []>} : vector<16x128xbf16>, vector<128x128xbf16>, vector<16x128xf32> -> vector<16x128xf32>
    %c0_9 = arith.constant 0 : index
    %c0_10 = arith.constant 0 : index
    %11 = vector.load %arg5[%c0_9, %c0_10] : memref<1x128xf32, #tpu.memory_space<vmem>>, vector<1x128xf32>
    %12 = vector.broadcast %11 : vector<1x128xf32> to vector<16x128xf32>
    %13 = arith.addf %10, %12 : vector<16x128xf32>
    %c0_11 = arith.constant 0 : index
    %c0_12 = arith.constant 0 : index
    %14 = vector.load %arg6[%c0_11, %c0_12] : memref<16x128xf32, #tpu.memory_space<vmem>>, vector<16x128xf32>
    tpu.vector_store %arg6[%c0_11, %c0_12], %13 {strides = array<i32>} : memref<16x128xf32, #tpu.memory_space<vmem>>, vector<16x128xf32>,
    return
  }
  func.func @transform_0(%arg0: i32) -> (i32, i32) {
    %c0_i32 = arith.constant 0 : i32
    %c0_i32_0 = arith.constant 0 : i32
    return %arg0, %c0_i32 : i32, i32
  }
  func.func @transform_1(%arg0: i32) -> (i32, i32) {
    %c0_i32 = arith.constant 0 : i32
    %c0_i32_0 = arith.constant 0 : i32
    %c0_i32_1 = arith.constant 0 : i32
    return %c0_i32, %c0_i32_0 : i32, i32
  }
  func.func @transform_2(%arg0: i32) -> (i32, i32) {
    %c0_i32 = arith.constant 0 : i32
    %c0_i32_0 = arith.constant 0 : i32
    %c0_i32_1 = arith.constant 0 : i32
    return %c0_i32, %c0_i32_0 : i32, i32
  }
  func.func @transform_3(%arg0: i32) -> (i32, i32) {
    %c0_i32 = arith.constant 0 : i32
    %c0_i32_0 = arith.constant 0 : i32
    %c0_i32_1 = arith.constant 0 : i32
    return %c0_i32, %c0_i32_0 : i32, i32
  }
  func.func @transform_4(%arg0: i32) -> (i32, i32) {
    %c0_i32 = arith.constant 0 : i32
    %c0_i32_0 = arith.constant 0 : i32
    %c0_i32_1 = arith.constant 0 : i32
    return %c0_i32, %c0_i32_0 : i32, i32
  }
  func.func @transform_5(%arg0: i32) -> (i32, i32) {
    %c0_i32 = arith.constant 0 : i32
    %c0_i32_0 = arith.constant 0 : i32
    return %arg0, %c0_i32 : i32, i32
  }
}

module attributes {stable_mosaic.version = 11 : i64} {
  func.func @decoder_kernel(%arg0: i32, %arg1: memref<16x32xbf16, #tpu.memory_space<vmem>>, %arg2: memref<32x128xbf16, #tpu.memory_space<vmem>>, %arg3: memref<1x128xf32, #tpu.memory_space<vmem>>, %arg4: memref<128x128xbf16, #tpu.memory_space<vmem>>, %arg5: memref<1x128xf32, #tpu.memory_space<vmem>>, %arg6: memref<16x128xf32, #tpu.memory_space<vmem>>) attributes {dimension_semantics = [#tpu.dimension_semantics<parallel>], iteration_bounds = array<i64: 2>, scalar_prefetch = 0 : i64, scratch_operands = 0 : i64, tpu.core_type = #tpu.core_type<tc>, window_params = [{transform_indices = @transform_0, window_bounds = array<i64: 16, 32>}, {pipeline_mode = #tpu.pipeline_mode<synchronous>, transform_indices = @transform_1, window_bounds = array<i64: 32, 128>}, {pipeline_mode = #tpu.pipeline_mode<synchronous>, transform_indices = @transform_2, window_bounds = array<i64: 1, 128>}, {pipeline_mode = #tpu.pipeline_mode<synchronous>, transform_indices = @transform_3, window_bounds = array<i64: 128, 128>}, {pipeline_mode = #tpu.pipeline_mode<synchronous>, transform_indices = @transform_4, window_bounds = array<i64: 1, 128>}, {transform_indices = @transform_5, window_bounds = array<i64: 16, 128>}]} {
    %c0 = arith.constant 0 : index
    %c0_0 = arith.constant 0 : index
    %0 = vector.load %arg1[%c0, %c0_0] : memref<16x32xbf16, #tpu.memory_space<vmem>>, vector<16x32xbf16>
    %c0_1 = arith.constant 0 : index
    %c0_2 = arith.constant 0 : index
    %1 = vector.load %arg2[%c0_1, %c0_2] : memref<32x128xbf16, #tpu.memory_space<vmem>>, vector<32x128xbf16>
    %cst = arith.constant dense<0.000000e+00> : vector<16x128xf32>
    %2 = tpu.matmul %0, %1, %cst {dimension_numbers = #tpu.dot_dimension_numbers<[1], [0], [0], [1], [0, 0, 1, 1], [], []>} : vector<16x32xbf16>, vector<32x128xbf16>, vector<16x128xf32> -> vector<16x128xf32>
    %c0_3 = arith.constant 0 : index
    %c0_4 = arith.constant 0 : index
    %3 = vector.load %arg3[%c0_3, %c0_4] : memref<1x128xf32, #tpu.memory_space<vmem>>, vector<1x128xf32>
    %4 = vector.broadcast %3 : vector<1x128xf32> to vector<16x128xf32>
    %5 = arith.addf %2, %4 : vector<16x128xf32>
    %cst_5 = arith.constant 0.000000e+00 : f32
    %6 = vector.broadcast %cst_5 : f32 to vector<16x128xf32>
    %7 = arith.maximumf %5, %6 : vector<16x128xf32>
    %8 = arith.truncf %7 : vector<16x128xf32> to vector<16x128xbf16>
    %c0_6 = arith.constant 0 : index
    %c0_7 = arith.constant 0 : index
    %9 = vector.load %arg4[%c0_6, %c0_7] : memref<128x128xbf16, #tpu.memory_space<vmem>>, vector<128x128xbf16>
    %cst_8 = arith.constant dense<0.000000e+00> : vector<16x128xf32>
    %10 = tpu.matmul %8, %9, %cst_8 {dimension_numbers = #tpu.dot_dimension_numbers<[1], [0], [0], [1], [0, 0, 1, 1], [], []>} : vector<16x128xbf16>, vector<128x128xbf16>, vector<16x128xf32> -> vector<16x128xf32>
    %c0_9 = arith.constant 0 : index
    %c0_10 = arith.constant 0 : index
    %11 = vector.load %arg5[%c0_9, %c0_10] : memref<1x128xf32, #tpu.memory_space<vmem>>, vector<1x128xf32>
    %12 = vector.broadcast %11 : vector<1x128xf32> to vector<16x128xf32>
    %13 = arith.addf %10, %12 : vector<16x128xf32>
    %c0_11 = arith.constant 0 : index
    %c0_12 = arith.constant 0 : index
    %14 = vector.load %arg6[%c0_11, %c0_12] : memref<16x128xf32, #tpu.memory_space<vmem>>, vector<16x128xf32>
    tpu.vector_store %arg6[%c0_11, %c0_12], %13 {strides = array<i32>} : memref<16x128xf32, #tpu.memory_space<vmem>>, vector<16x128xf32>,
    return
  }
  func.func @transform_0(%arg0: i32) -> (i32, i32) {
    %c0_i32 = arith.constant 0 : i32
    %c0_i32_0 = arith.constant 0 : i32
    return %arg0, %c0_i32 : i32, i32
  }
  func.func @transform_1(%arg0: i32) -> (i32, i32) {
    %c0_i32 = arith.constant 0 : i32
    %c0_i32_0 = arith.constant 0 : i32
    %c0_i32_1 = arith.constant 0 : i32
    return %c0_i32, %c0_i32_0 : i32, i32
  }
  func.func @transform_2(%arg0: i32) -> (i32, i32) {
    %c0_i32 = arith.constant 0 : i32
    %c0_i32_0 = arith.constant 0 : i32
    %c0_i32_1 = arith.constant 0 : i32
    return %c0_i32, %c0_i32_0 : i32, i32
  }
  func.func @transform_3(%arg0: i32) -> (i32, i32) {
    %c0_i32 = arith.constant 0 : i32
    %c0_i32_0 = arith.constant 0 : i32
    %c0_i32_1 = arith.constant 0 : i32
    return %c0_i32, %c0_i32_0 : i32, i32
  }
  func.func @transform_4(%arg0: i32) -> (i32, i32) {
    %c0_i32 = arith.constant 0 : i32
    %c0_i32_0 = arith.constant 0 : i32
    %c0_i32_1 = arith.constant 0 : i32
    return %c0_i32, %c0_i32_0 : i32, i32
  }
  func.func @transform_5(%arg0: i32) -> (i32, i32) {
    %c0_i32 = arith.constant 0 : i32
    %c0_i32_0 = arith.constant 0 : i32
    return %arg0, %c0_i32 : i32, i32
  }
}

</mosaic_0001>

<bundles_post_ra>
// kernel: _decoder_forward_jit.1
= control target key start
LH: loop header
LB: loop body
LE: loop exit
PB: predicated region body
PF: predicated region fallthrough
CT: control target
= control target key end

     0   :  { %10 = vsyncpa [#allocation3], 0  ;;  %s941_s0 = inlined_call_operand.vmem [shape: bf16[32,32], index: 0, kind: input, shape index: {}]   ;;  %s942_s1 = inlined_call_operand.vmem [shape: bf16[32,128], index: 1, kind: input, shape index: {}]   ;;  %s943_s2 = inlined_call_operand.vmem [shape: f32[1,128], index: 2, kind: input, shape index: {}]   ;;  %s944_s3 = inlined_call_operand.hbm [shape: bf16[128,128], index: 3, kind: input, shape index: {}]   ;;  %s945_s4 = inlined_call_operand.vmem [shape: f32[1,128], index: 4, kind: input, shape index: {}]   ;;  %s946_s5 = inlined_call_operand.hbm [shape: f32[32,128], index: 5, kind: output, shape index: {}]  }
   0x1   :  { %11 = vsyncpa [#allocation4], 0 }
   0x2   :  { %13 = vsyncpa [#allocation4 + $0x1], 0  ;;  %s792_s18 = smov 0   ;;  %s794_s19 = smov 0  }
   0x3   :  { %s796_s20 = smov 0   ;;  %s798_s21 = smov 0  }
   0x4 LB: > { %s813_s22 = sadd.s32 4294967295, %s752_s21   ;;  %s522_s23 = sadd.s32 4294967294, %s752_s21   ;;  %s752_s21 = sphi %s798_s21, %s962_s21   ;;  %s748_s20 = sphi %s796_s20, %s961_s20   ;;  %s744_s19 = sphi %s794_s19, %s960_s19   ;;  %s740_s18 = sphi %s792_s18, %s959_s18  }
   0x5   : > { %s817_s24 = sadd.s32 1, %s752_s21   ;;  %s136_s25 = sadd.s32 1, %s748_s20 }
   0x6   : > { %s133_s26 = ssub.s32 %s752_s21, %s817_s24  ;;  %p146_p0 = scmp.ne.s32.totalorder %s748_s20, %s744_s19 }
   0x7   : > { %p134_p1 = scmp.eq.s32.totalorder %s133_s26, 0  ;;  %p147_p2 = scmp.eq.s32.totalorder %s813_s22, 1 }
   0x8   : > { %p152_p3 = scmp.ne.s32.totalorder %s744_s19, %s740_s18  ;;  %p153_p4 = scmp.eq.s32.totalorder %s522_s23, 1 }
   0x9   : > { %s828_s27 = scalar_select %p134_p1, %s748_s20, %s136_s25  }
   0xa   : > { %p830_p5 = por %p147_p2, %p146_p0  ;;  %p834_p6 = por %p153_p4, %p152_p3 }
   0xb   : > { %p523_p7 = scmp.ge.s32.totalorder %s752_s21, 1  ;;  %p160_p8 = scmp.lt.s32.totalorder %s752_s21, 3 }
   0xc   : > { %s950_s28 = scalar_select %p830_p5, 1, 0 }
   0xd   : > { %s951_s29 = scalar_select %p834_p6, 1, 0 }
   0xe   : > { %p947_p9 = scmp.eq.s32.totalorder %s813_s22, 0  ;;  %p841_p10 = pnand %p523_p7, %p160_p8 }
   0xf   : > { %s754_s6 = smov [#allocation2]   ;;  %s658_s11 = scalar_lea.hbm %s944_s3, 1024 }
  0x10   : > { %s952_s30 = scalar_select %p841_p10, 1, 0 }
  0x11   : > { %s178_s7 = sshll.u32 %s754_s6, 4  ;;  %p597_p11 = pneg %p841_p10  ;;  %s179_s7 = int_to_ptr.vmem [resolvable:$true] %s178_s7 }
  0x12   : > { %p659_p13 = scmp.ne.s32.totalorder %s944_s3, %s658_s11  ;;  %p665_p3 = scmp.lt.u32.totalorder %s658_s11, %s944_s3 }
  0x13   : > { %p849_p12 = pnand %p947_p9, %p597_p11 }
  0x15   : > { %p660_p0 = pneg %p849_p12 }
  0x17   : > { %p661_p1 = pnand %p660_p0, %p659_p13 }
  0x19   : > { %p662_p2 = pneg %p661_p1 }
  0x1b   : > { %p667_p4 = pnand %p665_p3, %p662_p2 }
  0x1d   : > { %670 = shalt.err (!%p667_p4)
}
  0x1e   : > { %s671_s16 = scalar_lea.vmem %s179_s7, 1024  ;;  %p679_p9 = scmp.lt.s32.totalorder %s179_s7, %s179_s7 }
  0x1f   : > { %p672_p7 = scmp.ne.s32.totalorder %s179_s7, %s671_s16  ;;  %p680_p6 = scmp.lt.s32.totalorder %s671_s16, %s671_s16 }
  0x21   : > { %p674_p8 = pnand %p672_p7, %p660_p0  ;;  %p681_p5 = por %p680_p6, %p679_p9 }
  0x23   : > { %p675_p11 = pneg %p674_p8 }
  0x25   : > { %p682_p10 = pnand %p681_p5, %p675_p11 }
  0x27   : > { %685 = shalt.err (!%p682_p10)
}
  0x28   : > { %s755_s17 = smov 64   ;;  %s756_s23 = smov 4  }
  0x29   : > { %600 = dma.hbm_to_vmem [thread:$0]  (!%p849_p12), %s944_s3, 1024, %s179_s7, [#allocation3], %s755_s17, %s755_s17, %s756_s23  }
  0x2a   : > { %p954_p13 = scmp.ne.s32.totalorder %s952_s30, 0 }
  0x2b   : > { %p955_p1 = scmp.eq.s32.totalorder (!%p954_p13), %s813_s22, 0 }
  0x2c   : > { %206 = sbr.rel (%p954_p13) target bundleno = 513 (0x201), region = 40 }
  0x33   : > { %731 = dma.done.wait (%p955_p1), [#allocation3], 1024   ;;  %p956_p0 = pmov %p955_p1 }
  0x34   : > { %s529_s6 = sshll.u32 %s813_s22, 1  ;;  %v757_v0 = vmov 0.0   ;;  %vm758_vm0 = vmmov 0   ;;  %v647_v1 = vld [vmem:[%s942_s1] sm:$0xff]   ;;  %v648_v2 = vld [vmem:[%s942_s1 + $0x8] sm:$0xff]   ;;  %v650_v3 = vld [vmem:[#allocation2] sm:$0xff]  }
  0x35   : > { %733 = vsyncadd (%p956_p0), [#allocation3], 4294966272  ;;  %563 = vmatprep.subr.bf16.mxu0 %v757_v0  ;;  %567 = vmatprep.mubr.msk.bf16.mxu0 %vm758_vm0, %v757_v0  ;;  %p235_p5 = scmp.lt.s32.totalorder %s529_s6, 3  ;;  %v651_v5 = vld [vmem:[#allocation2 + $0x8] sm:$0xff]   ;;  %vm272_vm1 = vcmask 261120   ;;  %v652_v6 = vld [vmem:[#allocation2 + $0x10] sm:$0xff]  }
  0x36   : > { %571 = vmatprep.subr.bf16.mxu1 %v757_v0  ;;  %587 = vmatprep.mubr.msk.bf16.mxu1 %vm758_vm0, %v757_v0  ;;  %v653_v7 = vld [vmem:[#allocation2 + $0x18] sm:$0xff]   ;;  %v654_v8 = vld [vmem:[#allocation2 + $0x20] sm:$0xff]   ;;  %v655_v9 = vld [vmem:[#allocation2 + $0x28] sm:$0xff]   ;;  %s231_s16 = sand.u32 1, %s744_s19   ;;  %p957_p9 = scmp.ne.s32.totalorder %s950_s28, 0 }
  0x37   : > { %s964_s6 = smov (!%p235_p5, %s529_s6), 3  ;;  %564 = vmatpush3.bf16.msra.mxu0 %v647_v1  ;;  %572 = vmatpush3.bf16.msra.mxu1 %v650_v3  ;;  %v656_v10 = vld [vmem:[#allocation2 + $0x30] sm:$0xff]   ;;  %v657_v11 = vld [vmem:[#allocation2 + $0x38] sm:$0xff]   ;;  %s528_s17 = sshll.u32 %s231_s16, 4 }
  0x38   : > { %s530_s7 = sshll.u32 %s964_s6, 2  ;;  %565 = vmatprep.subr.bf16.mxu0 %v757_v0  ;;  %573 = vmatprep.subr.bf16.mxu1 %v757_v0  ;;  %v531_v12 = vld [vmem:[%s943_s2] ss:$0 sm:$0xff]  ;;  %s233_s26 = scalar_lea.vmem [#allocation5], %s528_s17 }
  0x39   : > { %s238_s11 = scalar_lea.vmem %s941_s0, %s530_s7  ;;  %v536_v22 = vld [vmem:[%s945_s4] ss:$0 sm:$0xff]  ;;  %s448_s6 = sshll.u32 %s233_s26, 4  ;;  %s893_s6 = int_to_ptr.vmem [resolvable:$true] %s448_s6 }
  0x3a   : > { %v649_v4 = vld [vmem:[%s238_s11] sm:$0xff]   ;;  %s550_s7 = sshll.u32 %s813_s22, 8  ;;  %s900_s10 = scalar_lea.sflag [#allocation4], %s231_s16 }
  0x3b   : > { %566 = vmatpush3.bf16.msra.mxu0 %v648_v2  ;;  %574 = vmatpush3.bf16.msra.mxu1 %v651_v5  ;;  %s898_s9 = scalar_lea.hbm %s946_s5, %s550_s7  ;;  %s686_s22 = scalar_lea.vmem %s893_s6, 256 }
  0x3c   : > { %575 = vmatprep.subr.bf16.mxu1 %v757_v0  ;;  %p687_p6 = scmp.ne.s32.totalorder %s893_s6, %s686_s22  ;;  %s759_s11 = smov [#allocation5]  }
  0x3d   : > { %s690_s12 = sshll.u32 %s759_s11, 4  ;;  %s691_s12 = int_to_ptr.vmem [resolvable:$false] %s690_s12 }
  0x3e   : > { %568 = vmatmul.mubr.msk.bf16.vlgmr.msra.gmra.mrb[0].mxu0 %vm272_vm1, %v649_v4  ;;  %p688_p10 = pnand %p687_p6, %p957_p9  ;;  %s692_s13 = scalar_lea.vmem %s691_s12, 512 }
  0x3f   : > { %576 = vmatpush3.bf16.msra.mxu1 %v652_v6  ;;  %p693_p2 = scmp.lt.s32.totalorder %s893_s6, %s691_s12  ;;  %p694_p3 = scmp.lt.s32.totalorder %s692_s13, %s686_s22 }
  0x40   : > { %577 = vmatprep.subr.bf16.mxu1 %v757_v0  ;;  %p689_p12 = pneg %p688_p10 }
  0x41   : > { %p695_p4 = por %p694_p3, %p693_p2 }
  0x43   : > { %578 = vmatpush3.bf16.msra.mxu1 %v653_v7  ;;  %p696_p7 = pnand %p695_p4, %p689_p12 }
  0x44   : > { %579 = vmatprep.subr.bf16.mxu1 %v757_v0 }
  0x47   : > { %580 = vmatpush3.bf16.msra.mxu1 %v654_v8 }
  0x48   : > { %581 = vmatprep.subr.bf16.mxu1 %v757_v0 }
  0x4b   : > { %582 = vmatpush3.bf16.msra.mxu1 %v655_v9 }
  0x4c   : > { %583 = vmatprep.subr.bf16.mxu1 %v757_v0 }
  0x4f   : > { %584 = vmatpush3.bf16.msra.mxu1 %v656_v10 }
  0x50   : > { %585 = vmatprep.subr.bf16.mxu1 %v757_v0 }
  0x53   : > { %586 = vmatpush3.bf16.msra.mxu1 %v657_v11 }
 0x111   : > { %v310_v13 = vpop.f32.mrb[0].mxu0 }
 0x112   : > { %v311_v14 = vadd.f32 %v531_v12, %v310_v13  ;;  %v569_v15 = vpop.f32.mrb[1].mxu0 }
 0x113   : > { %v313_v16 = vpop.f32.mrb[2].mxu0 }
 0x114   : > { %v314_v17 = vadd.f32 %v531_v12, %v313_v16  ;;  %v570_v18 = vpop.f32.mrb[3].mxu0  ;;  %v317_v19 = vmax.f32 %v311_v14, 0.0 }
 0x116   : > { %v318_v20 = vmax.f32 %v314_v17, 0.0 }
 0x118   : > { %v319_v21 = vpack.c.bf16 %v318_v20, %v317_v19 }
 0x11a   : > { %588 = vmatmul.mubr.bf16.vlgmr.msra.gmra.mrb[0].mxu1 %v319_v21 }
 0x1ed   : > { %v425_v23 = vpop.f32.mrb[0].mxu1 }
 0x1ee   : > { %v426_v24 = vadd.f32 %v536_v22, %v425_v23  ;;  %v589_v25 = vpop.f32.mrb[1].mxu1 }
 0x1ef   : > { %v428_v26 = vpop.f32.mrb[2].mxu1 }
 0x1f0   : > { %432 = vst [vmem:[%s233_s26] sm:$0xff] %v426_v24  ;;  %v429_v27 = vadd.f32 %v536_v22, %v428_v26  ;;  %v590_v28 = vpop.f32.mrb[3].mxu1 }
 0x1f2   : > { %433 = vst [vmem:[%s233_s26 + $0x8] sm:$0xff] %v429_v27 }
 0x1f3   : > { %699 = shalt.err (!%p696_p7)
}
 0x1f4   : > { %s700_s14 = scalar_lea.hbm %s898_s9, 256  ;;  %s704_s17 = scalar_lea.hbm %s946_s5, 512 }
 0x1f5   : > { %p701_p8 = scmp.ne.s32.totalorder %s898_s9, %s700_s14  ;;  %p705_p1 = scmp.lt.u32.totalorder %s898_s9, %s946_s5 }
 0x1f6   : > { %p706_p0 = scmp.lt.u32.totalorder %s704_s17, %s700_s14  ;;  %p708_p6 = scmp.lt.u32.totalorder %s700_s14, %s898_s9 }
 0x1f7   : > { %p702_p11 = pnand %p701_p8, %p957_p9 }
 0x1f8   : > { %p707_p5 = por %p706_p0, %p705_p1 }
 0x1f9   : > { %p703_p13 = pneg %p702_p11 }
 0x1fa   : > { %p709_p10 = por %p708_p6, %p707_p5 }
 0x1fc   : > { %p710_p12 = pnand %p709_p10, %p703_p13 }
 0x1fe   : > { %713 = shalt.err (!%p710_p12)
}
 0x1ff   : > { %s760_s26 = smov 128   ;;  %s761_s7 = smov 8  }
 0x200   : > { %595 = dma.vmem_to_hbm [thread:$0]  (%p957_p9), %s893_s6, 256, %s898_s9, %s900_s10, %s760_s26, %s760_s26, %s761_s7  }
 0x201 PF: > { %p607_p2 = scmp.ge.s32.totalorder %s752_s21, 2  ;;  %s463_s8 = sand.u32 1, %s740_s18  }
 0x202   : > { %p958_p3 = scmp.ne.s32.totalorder %s951_s29, 0  ;;  %s464_s30 = scalar_lea.sflag [#allocation4], %s463_s8 }
 0x204   : > { %p602_p4 = pnand %p607_p2, %p958_p3 }
 0x206   : > { %735 = dma.done.wait (!%p602_p4), %s464_s30, 256  }
 0x207   : > { %737 = vsyncadd (!%p602_p4), %s464_s30, 4294967040  ;;  %p16_p7 = scmp.ge.s32.totalorder %s817_s24, 4   ;;  %s959_s18 = smov %s744_s19 }
 0x208   : > { %s960_s19 = smov %s748_s20  ;;  %s961_s20 = smov %s828_s27 }
 0x209   : > { %s962_s21 = smov %s817_s24  ;;  %18 = sbr.rel (!%p16_p7) target bundleno = 4 (0x4), region = 80 }
 0x210   :  { %469 = vsyncpa [#allocation3], 1 }
 0x211   :  { %471 = vsyncpa [#allocation3 + $0x1], 1 }
 0x212   :  { %472 = vsyncpa [#allocation4], 1 }
 0x213   :  { %474 = vsyncpa [#allocation4 + $0x1], 1 }

// kernel: _decoder_forward_jit.1
= control target key start
LH: loop header
LB: loop body
LE: loop exit
PB: predicated region body
PF: predicated region fallthrough
CT: control target
= control target key end

     0   :  { %10 = vsyncpa [#allocation3], 0  ;;  %s941_s0 = inlined_call_operand.vmem [shape: bf16[32,32], index: 0, kind: input, shape index: {}]   ;;  %s942_s1 = inlined_call_operand.vmem [shape: bf16[32,128], index: 1, kind: input, shape index: {}]   ;;  %s943_s2 = inlined_call_operand.vmem [shape: f32[1,128], index: 2, kind: input, shape index: {}]   ;;  %s944_s3 = inlined_call_operand.hbm [shape: bf16[128,128], index: 3, kind: input, shape index: {}]   ;;  %s945_s4 = inlined_call_operand.vmem [shape: f32[1,128], index: 4, kind: input, shape index: {}]   ;;  %s946_s5 = inlined_call_operand.hbm [shape: f32[32,128], index: 5, kind: output, shape index: {}]  }
   0x1   :  { %11 = vsyncpa [#allocation4], 0 }
   0x2   :  { %13 = vsyncpa [#allocation4 + $0x1], 0  ;;  %s792_s18 = smov 0   ;;  %s794_s19 = smov 0  }
   0x3   :  { %s796_s20 = smov 0   ;;  %s798_s21 = smov 0  }
   0x4 LB: > { %s813_s22 = sadd.s32 4294967295, %s752_s21   ;;  %s522_s23 = sadd.s32 4294967294, %s752_s21   ;;  %s752_s21 = sphi %s798_s21, %s962_s21   ;;  %s748_s20 = sphi %s796_s20, %s961_s20   ;;  %s744_s19 = sphi %s794_s19, %s960_s19   ;;  %s740_s18 = sphi %s792_s18, %s959_s18  }
   0x5   : > { %s817_s24 = sadd.s32 1, %s752_s21   ;;  %s136_s25 = sadd.s32 1, %s748_s20 }
   0x6   : > { %s133_s26 = ssub.s32 %s752_s21, %s817_s24  ;;  %p146_p0 = scmp.ne.s32.totalorder %s748_s20, %s744_s19 }
   0x7   : > { %p134_p1 = scmp.eq.s32.totalorder %s133_s26, 0  ;;  %p147_p2 = scmp.eq.s32.totalorder %s813_s22, 1 }
   0x8   : > { %p152_p3 = scmp.ne.s32.totalorder %s744_s19, %s740_s18  ;;  %p153_p4 = scmp.eq.s32.totalorder %s522_s23, 1 }
   0x9   : > { %s828_s27 = scalar_select %p134_p1, %s748_s20, %s136_s25  }
   0xa   : > { %p830_p5 = por %p147_p2, %p146_p0  ;;  %p834_p6 = por %p153_p4, %p152_p3 }
   0xb   : > { %p523_p7 = scmp.ge.s32.totalorder %s752_s21, 1  ;;  %p160_p8 = scmp.lt.s32.totalorder %s752_s21, 3 }
   0xc   : > { %s950_s28 = scalar_select %p830_p5, 1, 0 }
   0xd   : > { %s951_s29 = scalar_select %p834_p6, 1, 0 }
   0xe   : > { %p947_p9 = scmp.eq.s32.totalorder %s813_s22, 0  ;;  %p841_p10 = pnand %p523_p7, %p160_p8 }
   0xf   : > { %s754_s6 = smov [#allocation2]   ;;  %s658_s11 = scalar_lea.hbm %s944_s3, 1024 }
  0x10   : > { %s952_s30 = scalar_select %p841_p10, 1, 0 }
  0x11   : > { %s178_s7 = sshll.u32 %s754_s6, 4  ;;  %p597_p11 = pneg %p841_p10  ;;  %s179_s7 = int_to_ptr.vmem [resolvable:$true] %s178_s7 }
  0x12   : > { %p659_p13 = scmp.ne.s32.totalorder %s944_s3, %s658_s11  ;;  %p665_p3 = scmp.lt.u32.totalorder %s658_s11, %s944_s3 }
  0x13   : > { %p849_p12 = pnand %p947_p9, %p597_p11 }
  0x15   : > { %p660_p0 = pneg %p849_p12 }
  0x17   : > { %p661_p1 = pnand %p660_p0, %p659_p13 }
  0x19   : > { %p662_p2 = pneg %p661_p1 }
  0x1b   : > { %p667_p4 = pnand %p665_p3, %p662_p2 }
  0x1d   : > { %670 = shalt.err (!%p667_p4)
}
  0x1e   : > { %s671_s16 = scalar_lea.vmem %s179_s7, 1024  ;;  %p679_p9 = scmp.lt.s32.totalorder %s179_s7, %s179_s7 }
  0x1f   : > { %p672_p7 = scmp.ne.s32.totalorder %s179_s7, %s671_s16  ;;  %p680_p6 = scmp.lt.s32.totalorder %s671_s16, %s671_s16 }
  0x21   : > { %p674_p8 = pnand %p672_p7, %p660_p0  ;;  %p681_p5 = por %p680_p6, %p679_p9 }
  0x23   : > { %p675_p11 = pneg %p674_p8 }
  0x25   : > { %p682_p10 = pnand %p681_p5, %p675_p11 }
  0x27   : > { %685 = shalt.err (!%p682_p10)
}
  0x28   : > { %s755_s17 = smov 64   ;;  %s756_s23 = smov 4  }
  0x29   : > { %600 = dma.hbm_to_vmem [thread:$0]  (!%p849_p12), %s944_s3, 1024, %s179_s7, [#allocation3], %s755_s17, %s755_s17, %s756_s23  }
  0x2a   : > { %p954_p13 = scmp.ne.s32.totalorder %s952_s30, 0 }
  0x2b   : > { %p955_p1 = scmp.eq.s32.totalorder (!%p954_p13), %s813_s22, 0 }
  0x2c   : > { %206 = sbr.rel (%p954_p13) target bundleno = 513 (0x201), region = 40 }
  0x33   : > { %731 = dma.done.wait (%p955_p1), [#allocation3], 1024   ;;  %p956_p0 = pmov %p955_p1 }
  0x34   : > { %s529_s6 = sshll.u32 %s813_s22, 1  ;;  %v757_v0 = vmov 0.0   ;;  %vm758_vm0 = vmmov 0   ;;  %v647_v1 = vld [vmem:[%s942_s1] sm:$0xff]   ;;  %v648_v2 = vld [vmem:[%s942_s1 + $0x8] sm:$0xff]   ;;  %v650_v3 = vld [vmem:[#allocation2] sm:$0xff]  }
  0x35   : > { %733 = vsyncadd (%p956_p0), [#allocation3], 4294966272  ;;  %563 = vmatprep.subr.bf16.mxu0 %v757_v0  ;;  %567 = vmatprep.mubr.msk.bf16.mxu0 %vm758_vm0, %v757_v0  ;;  %p235_p5 = scmp.lt.s32.totalorder %s529_s6, 3  ;;  %v651_v5 = vld [vmem:[#allocation2 + $0x8] sm:$0xff]   ;;  %vm272_vm1 = vcmask 261120   ;;  %v652_v6 = vld [vmem:[#allocation2 + $0x10] sm:$0xff]  }
  0x36   : > { %571 = vmatprep.subr.bf16.mxu1 %v757_v0  ;;  %587 = vmatprep.mubr.msk.bf16.mxu1 %vm758_vm0, %v757_v0  ;;  %v653_v7 = vld [vmem:[#allocation2 + $0x18] sm:$0xff]   ;;  %v654_v8 = vld [vmem:[#allocation2 + $0x20] sm:$0xff]   ;;  %v655_v9 = vld [vmem:[#allocation2 + $0x28] sm:$0xff]   ;;  %s231_s16 = sand.u32 1, %s744_s19   ;;  %p957_p9 = scmp.ne.s32.totalorder %s950_s28, 0 }
  0x37   : > { %s964_s6 = smov (!%p235_p5, %s529_s6), 3  ;;  %564 = vmatpush3.bf16.msra.mxu0 %v647_v1  ;;  %572 = vmatpush3.bf16.msra.mxu1 %v650_v3  ;;  %v656_v10 = vld [vmem:[#allocation2 + $0x30] sm:$0xff]   ;;  %v657_v11 = vld [vmem:[#allocation2 + $0x38] sm:$0xff]   ;;  %s528_s17 = sshll.u32 %s231_s16, 4 }
  0x38   : > { %s530_s7 = sshll.u32 %s964_s6, 2  ;;  %565 = vmatprep.subr.bf16.mxu0 %v757_v0  ;;  %573 = vmatprep.subr.bf16.mxu1 %v757_v0  ;;  %v531_v12 = vld [vmem:[%s943_s2] ss:$0 sm:$0xff]  ;;  %s233_s26 = scalar_lea.vmem [#allocation5], %s528_s17 }
  0x39   : > { %s238_s11 = scalar_lea.vmem %s941_s0, %s530_s7  ;;  %v536_v22 = vld [vmem:[%s945_s4] ss:$0 sm:$0xff]  ;;  %s448_s6 = sshll.u32 %s233_s26, 4  ;;  %s893_s6 = int_to_ptr.vmem [resolvable:$true] %s448_s6 }
  0x3a   : > { %v649_v4 = vld [vmem:[%s238_s11] sm:$0xff]   ;;  %s550_s7 = sshll.u32 %s813_s22, 8  ;;  %s900_s10 = scalar_lea.sflag [#allocation4], %s231_s16 }
  0x3b   : > { %566 = vmatpush3.bf16.msra.mxu0 %v648_v2  ;;  %574 = vmatpush3.bf16.msra.mxu1 %v651_v5  ;;  %s898_s9 = scalar_lea.hbm %s946_s5, %s550_s7  ;;  %s686_s22 = scalar_lea.vmem %s893_s6, 256 }
  0x3c   : > { %575 = vmatprep.subr.bf16.mxu1 %v757_v0  ;;  %p687_p6 = scmp.ne.s32.totalorder %s893_s6, %s686_s22  ;;  %s759_s11 = smov [#allocation5]  }
  0x3d   : > { %s690_s12 = sshll.u32 %s759_s11, 4  ;;  %s691_s12 = int_to_ptr.vmem [resolvable:$false] %s690_s12 }
  0x3e   : > { %568 = vmatmul.mubr.msk.bf16.vlgmr.msra.gmra.mrb[0].mxu0 %vm272_vm1, %v649_v4  ;;  %p688_p10 = pnand %p687_p6, %p957_p9  ;;  %s692_s13 = scalar_lea.vmem %s691_s12, 512 }
  0x3f   : > { %576 = vmatpush3.bf16.msra.mxu1 %v652_v6  ;;  %p693_p2 = scmp.lt.s32.totalorder %s893_s6, %s691_s12  ;;  %p694_p3 = scmp.lt.s32.totalorder %s692_s13, %s686_s22 }
  0x40   : > { %577 = vmatprep.subr.bf16.mxu1 %v757_v0  ;;  %p689_p12 = pneg %p688_p10 }
  0x41   : > { %p695_p4 = por %p694_p3, %p693_p2 }
  0x43   : > { %578 = vmatpush3.bf16.msra.mxu1 %v653_v7  ;;  %p696_p7 = pnand %p695_p4, %p689_p12 }
  0x44   : > { %579 = vmatprep.subr.bf16.mxu1 %v757_v0 }
  0x47   : > { %580 = vmatpush3.bf16.msra.mxu1 %v654_v8 }
  0x48   : > { %581 = vmatprep.subr.bf16.mxu1 %v757_v0 }
  0x4b   : > { %582 = vmatpush3.bf16.msra.mxu1 %v655_v9 }
  0x4c   : > { %583 = vmatprep.subr.bf16.mxu1 %v757_v0 }
  0x4f   : > { %584 = vmatpush3.bf16.msra.mxu1 %v656_v10 }
  0x50   : > { %585 = vmatprep.subr.bf16.mxu1 %v757_v0 }
  0x53   : > { %586 = vmatpush3.bf16.msra.mxu1 %v657_v11 }
 0x111   : > { %v310_v13 = vpop.f32.mrb[0].mxu0 }
 0x112   : > { %v311_v14 = vadd.f32 %v531_v12, %v310_v13  ;;  %v569_v15 = vpop.f32.mrb[1].mxu0 }
 0x113   : > { %v313_v16 = vpop.f32.mrb[2].mxu0 }
 0x114   : > { %v314_v17 = vadd.f32 %v531_v12, %v313_v16  ;;  %v570_v18 = vpop.f32.mrb[3].mxu0  ;;  %v317_v19 = vmax.f32 %v311_v14, 0.0 }
 0x116   : > { %v318_v20 = vmax.f32 %v314_v17, 0.0 }
 0x118   : > { %v319_v21 = vpack.c.bf16 %v318_v20, %v317_v19 }
 0x11a   : > { %588 = vmatmul.mubr.bf16.vlgmr.msra.gmra.mrb[0].mxu1 %v319_v21 }
 0x1ed   : > { %v425_v23 = vpop.f32.mrb[0].mxu1 }
 0x1ee   : > { %v426_v24 = vadd.f32 %v536_v22, %v425_v23  ;;  %v589_v25 = vpop.f32.mrb[1].mxu1 }
 0x1ef   : > { %v428_v26 = vpop.f32.mrb[2].mxu1 }
 0x1f0   : > { %432 = vst [vmem:[%s233_s26] sm:$0xff] %v426_v24  ;;  %v429_v27 = vadd.f32 %v536_v22, %v428_v26  ;;  %v590_v28 = vpop.f32.mrb[3].mxu1 }
 0x1f2   : > { %433 = vst [vmem:[%s233_s26 + $0x8] sm:$0xff] %v429_v27 }
 0x1f3   : > { %699 = shalt.err (!%p696_p7)
}
 0x1f4   : > { %s700_s14 = scalar_lea.hbm %s898_s9, 256  ;;  %s704_s17 = scalar_lea.hbm %s946_s5, 512 }
 0x1f5   : > { %p701_p8 = scmp.ne.s32.totalorder %s898_s9, %s700_s14  ;;  %p705_p1 = scmp.lt.u32.totalorder %s898_s9, %s946_s5 }
 0x1f6   : > { %p706_p0 = scmp.lt.u32.totalorder %s704_s17, %s700_s14  ;;  %p708_p6 = scmp.lt.u32.totalorder %s700_s14, %s898_s9 }
 0x1f7   : > { %p702_p11 = pnand %p701_p8, %p957_p9 }
 0x1f8   : > { %p707_p5 = por %p706_p0, %p705_p1 }
 0x1f9   : > { %p703_p13 = pneg %p702_p11 }
 0x1fa   : > { %p709_p10 = por %p708_p6, %p707_p5 }
 0x1fc   : > { %p710_p12 = pnand %p709_p10, %p703_p13 }
 0x1fe   : > { %713 = shalt.err (!%p710_p12)
}
 0x1ff   : > { %s760_s26 = smov 128   ;;  %s761_s7 = smov 8  }
 0x200   : > { %595 = dma.vmem_to_hbm [thread:$0]  (%p957_p9), %s893_s6, 256, %s898_s9, %s900_s10, %s760_s26, %s760_s26, %s761_s7  }
 0x201 PF: > { %p607_p2 = scmp.ge.s32.totalorder %s752_s21, 2  ;;  %s463_s8 = sand.u32 1, %s740_s18  }
 0x202   : > { %p958_p3 = scmp.ne.s32.totalorder %s951_s29, 0  ;;  %s464_s30 = scalar_lea.sflag [#allocation4], %s463_s8 }
 0x204   : > { %p602_p4 = pnand %p607_p2, %p958_p3 }
 0x206   : > { %735 = dma.done.wait (!%p602_p4), %s464_s30, 256  }
 0x207   : > { %737 = vsyncadd (!%p602_p4), %s464_s30, 4294967040  ;;  %p16_p7 = scmp.ge.s32.totalorder %s817_s24, 4   ;;  %s959_s18 = smov %s744_s19 }
 0x208   : > { %s960_s19 = smov %s748_s20  ;;  %s961_s20 = smov %s828_s27 }
 0x209   : > { %s962_s21 = smov %s817_s24  ;;  %18 = sbr.rel (!%p16_p7) target bundleno = 4 (0x4), region = 80 }
 0x210   :  { %469 = vsyncpa [#allocation3], 1 }
 0x211   :  { %471 = vsyncpa [#allocation3 + $0x1], 1 }
 0x212   :  { %472 = vsyncpa [#allocation4], 1 }
 0x213   :  { %474 = vsyncpa [#allocation4 + $0x1], 1 }

</bundles_post_ra>
